<compile_context>
chip_gen: v5e
topology: v5e:2x2
jax: 0.10.0
libtpu: 0.0.40
codegen_flags: <defaults>
</compile_context>

<pallas_src>
import jax
import jax.numpy as jnp
from jax.experimental import pallas as pl
from jax.experimental.pallas import tpu as pltpu


def _round_up(x, m):
    return ((x + m - 1) // m) * m


def mlp_kernel(x_ref, w1_ref, b1_ref, w2_ref, b2_ref, o_ref):
    # Cast x to the matmul dtype *in-kernel* (VPU op, hidden under the MXU);
    # avoids a separate padded-bf16 copy of x in HBM every call.
    x = x_ref[...].astype(w1_ref.dtype)
    # Hidden layer on the MXU: bf16 inputs, f32 accumulation.
    h = jnp.dot(x, w1_ref[...], preferred_element_type=jnp.float32)
    # Epilogue (bias + ReLU) in f32 on the VPU (v5e has no bf16 VPU).
    h = jnp.maximum(h + b1_ref[...], 0.0)
    # Output layer: bf16 into the MXU again, f32 accumulation, lane-dense store.
    o = jnp.dot(h.astype(w2_ref.dtype), w2_ref[...],
                preferred_element_type=jnp.float32)
    o_ref[...] = (o + b2_ref[...]).astype(o_ref.dtype)


def prepare_params(w1, b1, w2, b2, *, matmul_dtype=jnp.bfloat16):
    """One-time pad + cast of the weights/biases (hoisted out of the forward).

    w1: [in_dim, H]   b1: [H]        (layer_1, weight pre-transposed)
    w2: [H, out_dim]  b2: [out_dim]  (output,  weight pre-transposed)

    Zero padding preserves semantics: padded K columns contribute 0 to the
    dots, padded hidden columns hit zero w2 rows / zero b1 entries, padded
    output columns are sliced off in net_forward.
    """
    in_dim, h1 = w1.shape
    h2, out_dim = w2.shape
    assert h1 == h2, "Net.forward requires n_hidden_1 == n_hidden_2"
    K_pad = _round_up(in_dim, 128)
    H_pad = _round_up(h1, 128)
    O_pad = _round_up(out_dim, 128)

    w1_p = jnp.pad(w1, ((0, K_pad - in_dim), (0, H_pad - h1))).astype(matmul_dtype)
    w2_p = jnp.pad(w2, ((0, H_pad - h1), (0, O_pad - out_dim))).astype(matmul_dtype)
    b1_p = jnp.pad(b1.reshape(1, -1), ((0, 0), (0, H_pad - h1))).astype(jnp.float32)
    b2_p = jnp.pad(b2.reshape(1, -1), ((0, 0), (0, O_pad - out_dim))).astype(jnp.float32)
    return (w1_p, b1_p, w2_p, b2_p), (in_dim, out_dim)


def net_forward(x, params, logical_dims, *, batch_tile=256):
    """out = relu(x @ w1 + b1) @ w2 + b2, with params from prepare_params()."""
    w1_p, b1_p, w2_p, b2_p = params
    in_dim, out_dim = logical_dims
    B = x.shape[0]
    K_pad, H_pad = w1_p.shape
    O_pad = w2_p.shape[1]

    # Batch tiling: sublane-aligned, as large as VMEM allows (sweep batch_tile).
    TB = min(batch_tile, _round_up(B, 8))
    # v7x has 2 TensorCores: prefer >= 2 grid steps so the "parallel" axis can
    # shard across them instead of leaving one idle.
    if _round_up(B, TB) // TB < 2 and TB > 8:
        TB = max(8, _round_up(TB // 2, 8))
    B_pad = _round_up(B, TB)

    # x stays f32 (cast happens in-kernel); pad is a no-op when already aligned.
    x_p = jnp.pad(x, ((0, B_pad - B), (0, K_pad - in_dim)))

    grid = (B_pad // TB,)

    # Explicit VMEM budget: resident weights (single copy) + double-buffered
    # x/out stream tiles, with 2x headroom; clamp to [32 MiB, 64 MiB] so the
    # scheme works on v5e's 16 MiB default and v7x's 64 MiB physical VMEM.
    weight_bytes = ((w1_p.size + w2_p.size) * w1_p.dtype.itemsize
                    + (b1_p.size + b2_p.size) * 4)
    stream_bytes = 2 * TB * K_pad * 4 + 2 * TB * O_pad * 4
    vmem_limit = int(min(64 * 2**20, max(2 * (weight_bytes + stream_bytes),
                                         32 * 2**20)))

    cost = pl.CostEstimate(
        flops=2 * B_pad * (K_pad * H_pad + H_pad * O_pad),
        transcendentals=0,
        bytes_accessed=int(x_p.size * 4 + B_pad * O_pad * 4 + weight_bytes),
    )

    # Weights/biases: whole-array VMEM operands -> copied into VMEM once and
    # resident for every batch step (no re-DMA, no second pipeline buffer).
    resident = pl.BlockSpec(memory_space=pltpu.MemorySpace.VMEM)

    out_p = pl.pallas_call(
        mlp_kernel,
        out_shape=jax.ShapeDtypeStruct((B_pad, O_pad), jnp.float32),
        grid=grid,
        in_specs=[
            pl.BlockSpec((TB, K_pad), lambda i: (i, 0)),   # x: streamed per batch tile
            resident,                                      # w1
            resident,                                      # b1
            resident,                                      # w2
            resident,                                      # b2
        ],
        out_specs=pl.BlockSpec((TB, O_pad), lambda i: (i, 0)),
        compiler_params=pltpu.CompilerParams(
            # Batch steps are independent -> shardable across v7x's 2 TCs.
            dimension_semantics=("parallel",),
            vmem_limit_bytes=vmem_limit,
        ),
        cost_estimate=cost,
    )(x_p, w1_p, b1_p, w2_p, b2_p)

    # Strip padding back to the logical problem size.
    return out_p[:B, :out_dim]
    # TODO(synk): if H ever outgrows a single VMEM tile, add a trailing
    # "arbitrary" reduction grid axis over H with an f32 scratch accumulator
    # instead of splitting into two pallas_calls.


if __name__ == "__main__":
    # Net(in_dim, n_hidden_1, n_hidden_2, out_dim); forward needs H1 == H2.
    B, in_dim, hidden, out_dim = 2, 16, 32, 8

    key = jax.random.PRNGKey(0)
    k_x, k_w1, k_b1, k_w2, k_b2 = jax.random.split(key, 5)

    x = jax.random.normal(k_x, (B, in_dim), dtype=jnp.float32)

    # PyTorch-style uniform init, bound = 1/sqrt(fan_in).
    bound1 = 1.0 / jnp.sqrt(in_dim)
    w1 = jax.random.uniform(k_w1, (in_dim, hidden), jnp.float32, -bound1, bound1)
    b1 = jax.random.uniform(k_b1, (hidden,), jnp.float32, -bound1, bound1)

    bound2 = 1.0 / jnp.sqrt(hidden)
    w2 = jax.random.uniform(k_w2, (hidden, out_dim), jnp.float32, -bound2, bound2)
    b2 = jax.random.uniform(k_b2, (out_dim,), jnp.float32, -bound2, bound2)

    # One-time weight prep (pad + bf16 cast), then the fused forward.
    params, dims = prepare_params(w1, b1, w2, b2)
    params = jax.block_until_ready(params)

    out = net_forward(x, params, dims)
    out = jax.block_until_ready(out)

    # Reference in plain JAX with matching bf16 rounding of the matmul inputs.
    def bf(a):
        return a.astype(jnp.bfloat16).astype(jnp.float32)

    h_ref = jnp.maximum(bf(x) @ bf(w1) + b1, 0.0)
    ref = bf(h_ref) @ bf(w2) + b2

    assert out.shape == (B, out_dim)
    assert jnp.allclose(out, ref, atol=2e-3, rtol=2e-3), \
        float(jnp.max(jnp.abs(out - ref)))

    print("KERNEL_OK")
</pallas_src>

<mosaic_0001>
module attributes {stable_mosaic.version = 11 : i64} {
  func.func @mlp_kernel(%arg0: i32, %arg1: memref<8x128xf32, #tpu.memory_space<vmem>>, %arg2: memref<128x128xbf16, #tpu.memory_space<vmem>>, %arg3: memref<1x128xf32, #tpu.memory_space<vmem>>, %arg4: memref<128x128xbf16, #tpu.memory_space<vmem>>, %arg5: memref<1x128xf32, #tpu.memory_space<vmem>>, %arg6: memref<8x128xf32, #tpu.memory_space<vmem>>) attributes {dimension_semantics = [#tpu.dimension_semantics<parallel>], iteration_bounds = array<i64: 1>, scalar_prefetch = 0 : i64, scratch_operands = 0 : i64, tpu.core_type = #tpu.core_type<tc>, window_params = [{transform_indices = @transform_0, window_bounds = array<i64: 8, 128>}, {pipeline_mode = #tpu.pipeline_mode<synchronous>, transform_indices = @transform_1, window_bounds = array<i64: 128, 128>}, {pipeline_mode = #tpu.pipeline_mode<synchronous>, transform_indices = @transform_2, window_bounds = array<i64: 1, 128>}, {pipeline_mode = #tpu.pipeline_mode<synchronous>, transform_indices = @transform_3, window_bounds = array<i64: 128, 128>}, {pipeline_mode = #tpu.pipeline_mode<synchronous>, transform_indices = @transform_4, window_bounds = array<i64: 1, 128>}, {transform_indices = @transform_5, window_bounds = array<i64: 8, 128>}]} {
    %c0 = arith.constant 0 : index
    %c0_0 = arith.constant 0 : index
    %0 = vector.load %arg1[%c0, %c0_0] : memref<8x128xf32, #tpu.memory_space<vmem>>, vector<8x128xf32>
    %1 = arith.truncf %0 : vector<8x128xf32> to vector<8x128xbf16>
    %c0_1 = arith.constant 0 : index
    %c0_2 = arith.constant 0 : index
    %2 = vector.load %arg2[%c0_1, %c0_2] : memref<128x128xbf16, #tpu.memory_space<vmem>>, vector<128x128xbf16>
    %cst = arith.constant dense<0.000000e+00> : vector<8x128xf32>
    %3 = tpu.matmul %1, %2, %cst {dimension_numbers = #tpu.dot_dimension_numbers<[1], [0], [0], [1], [0, 0, 1, 1], [], []>} : vector<8x128xbf16>, vector<128x128xbf16>, vector<8x128xf32> -> vector<8x128xf32>
    %c0_3 = arith.constant 0 : index
    %c0_4 = arith.constant 0 : index
    %4 = vector.load %arg3[%c0_3, %c0_4] : memref<1x128xf32, #tpu.memory_space<vmem>>, vector<1x128xf32>
    %5 = vector.broadcast %4 : vector<1x128xf32> to vector<8x128xf32>
    %6 = arith.addf %3, %5 : vector<8x128xf32>
    %cst_5 = arith.constant 0.000000e+00 : f32
    %7 = vector.broadcast %cst_5 : f32 to vector<8x128xf32>
    %8 = arith.maximumf %6, %7 : vector<8x128xf32>
    %9 = arith.truncf %8 : vector<8x128xf32> to vector<8x128xbf16>
    %c0_6 = arith.constant 0 : index
    %c0_7 = arith.constant 0 : index
    %10 = vector.load %arg4[%c0_6, %c0_7] : memref<128x128xbf16, #tpu.memory_space<vmem>>, vector<128x128xbf16>
    %cst_8 = arith.constant dense<0.000000e+00> : vector<8x128xf32>
    %11 = tpu.matmul %9, %10, %cst_8 {dimension_numbers = #tpu.dot_dimension_numbers<[1], [0], [0], [1], [0, 0, 1, 1], [], []>} : vector<8x128xbf16>, vector<128x128xbf16>, vector<8x128xf32> -> vector<8x128xf32>
    %c0_9 = arith.constant 0 : index
    %c0_10 = arith.constant 0 : index
    %12 = vector.load %arg5[%c0_9, %c0_10] : memref<1x128xf32, #tpu.memory_space<vmem>>, vector<1x128xf32>
    %13 = vector.broadcast %12 : vector<1x128xf32> to vector<8x128xf32>
    %14 = arith.addf %11, %13 : vector<8x128xf32>
    %c0_11 = arith.constant 0 : index
    %c0_12 = arith.constant 0 : index
    %15 = vector.load %arg6[%c0_11, %c0_12] : memref<8x128xf32, #tpu.memory_space<vmem>>, vector<8x128xf32>
    tpu.vector_store %arg6[%c0_11, %c0_12], %14 {strides = array<i32>} : memref<8x128xf32, #tpu.memory_space<vmem>>, vector<8x128xf32>,
    return
  }
  func.func @transform_0(%arg0: i32) -> (i32, i32) {
    %c0_i32 = arith.constant 0 : i32
    %c0_i32_0 = arith.constant 0 : i32
    return %arg0, %c0_i32 : i32, i32
  }
  func.func @transform_1(%arg0: i32) -> (i32, i32) {
    %c0_i32 = arith.constant 0 : i32
    %c0_i32_0 = arith.constant 0 : i32
    %c0_i32_1 = arith.constant 0 : i32
    return %c0_i32, %c0_i32_0 : i32, i32
  }
  func.func @transform_2(%arg0: i32) -> (i32, i32) {
    %c0_i32 = arith.constant 0 : i32
    %c0_i32_0 = arith.constant 0 : i32
    %c0_i32_1 = arith.constant 0 : i32
    return %c0_i32, %c0_i32_0 : i32, i32
  }
  func.func @transform_3(%arg0: i32) -> (i32, i32) {
    %c0_i32 = arith.constant 0 : i32
    %c0_i32_0 = arith.constant 0 : i32
    %c0_i32_1 = arith.constant 0 : i32
    return %c0_i32, %c0_i32_0 : i32, i32
  }
  func.func @transform_4(%arg0: i32) -> (i32, i32) {
    %c0_i32 = arith.constant 0 : i32
    %c0_i32_0 = arith.constant 0 : i32
    %c0_i32_1 = arith.constant 0 : i32
    return %c0_i32, %c0_i32_0 : i32, i32
  }
  func.func @transform_5(%arg0: i32) -> (i32, i32) {
    %c0_i32 = arith.constant 0 : i32
    %c0_i32_0 = arith.constant 0 : i32
    return %arg0, %c0_i32 : i32, i32
  }
}

</mosaic_0001>

<bundles_post_ra>
// kernel: tpu_custom_call.1
= control target key start
LH: loop header
LB: loop body
LE: loop exit
PB: predicated region body
PF: predicated region fallthrough
CT: control target
= control target key end

     0   :  { %10 = vsyncpa [#allocation3], 0  ;;  %s495_s0 = inlined_call_operand.hbm [shape: f32[8,128], index: 0, kind: input, shape index: {}]   ;;  %s496_s1 = inlined_call_operand.hbm [shape: bf16[128,128], index: 1, kind: input, shape index: {}]   ;;  %s497_s2 = inlined_call_operand.vmem [shape: f32[1,128], index: 2, kind: input, shape index: {}]   ;;  %s498_s3 = inlined_call_operand.hbm [shape: bf16[128,128], index: 3, kind: input, shape index: {}]   ;;  %s499_s4 = inlined_call_operand.vmem [shape: f32[1,128], index: 4, kind: input, shape index: {}]   ;;  %s500_s5 = inlined_call_operand.hbm [shape: f32[8,128], index: 5, kind: output, shape index: {}]  }
   0x1   :  { %11 = vsyncpa [#allocation6], 0  ;;  %s28_s20 = sshll.u32 %s496_s1, 4  ;;  %s29_s20 = int_to_ptr.hbm [resolvable:$true] %s28_s20 }
   0x2   :  { %12 = vsyncpa [#allocation4], 0  ;;  %s441_s21 = smov [#allocation5]   ;;  %s18_s25 = sshll.u32 %s495_s0, 4  ;;  %s19_s25 = int_to_ptr.hbm [resolvable:$true] %s18_s25 }
   0x3   :  { %s30_s22 = sshll.u32 %s441_s21, 4  ;;  %s442_s26 = smov 64   ;;  %s31_s22 = int_to_ptr.vmem [resolvable:$true] %s30_s22 }
   0x4   :  { %s443_s27 = smov 4   ;;  %s444_s28 = smov [#allocation2]  }
   0x5   :  { %36 = dma.hbm_to_vmem [thread:$0]  %s29_s20, 1024, %s31_s22, [#allocation6], %s442_s26, %s442_s26, %s443_s27  }
   0x6   :  { %s20_s29 = sshll.u32 %s444_s28, 4  ;;  %s43_s7 = sshll.u32 %s498_s3, 4  ;;  %s21_s29 = int_to_ptr.vmem [resolvable:$true] %s20_s29  ;;  %s44_s7 = int_to_ptr.hbm [resolvable:$true] %s43_s7 }
   0x7   :  { %23 = dma.hbm_to_vmem [thread:$0]  %s19_s25, 128, %s21_s29, [#allocation3]  }
   0x8   :  { %s445_s1 = smov [#allocation7]  }
   0x9   :  { %s45_s8 = sshll.u32 %s445_s1, 4  ;;  %s46_s8 = int_to_ptr.vmem [resolvable:$true] %s45_s8 }
   0xa   :  { %51 = dma.hbm_to_vmem [thread:$0]  %s44_s7, 1024, %s46_s8, [#allocation6], %s442_s26, %s442_s26, %s443_s27  }
   0xb   :  { %435 = dma.done.wait [#allocation3], 128  }
   0xc   :  { %436 = vsyncadd [#allocation3], 4294967168 }
   0xd   :  { %437 = dma.done.wait [#allocation6], 2048  }
   0xe   :  { %438 = vsyncadd [#allocation6], 4294965248  ;;  %v322_v0 = vld [vmem:[#allocation5 + $0x38] sm:$0xff]  ;;  %v321_v1 = vld [vmem:[#allocation5 + $0x30] sm:$0xff]  ;;  %s446_s11 = smov [#allocation8]   ;;  %s240_s15 = sshll.u32 %s500_s5, 4  ;;  %s241_s15 = int_to_ptr.hbm [resolvable:$true] %s240_s15 }
   0xf   :  { %136 = vmatpush.bf16.msra.mxu0 %v322_v0  ;;  %v330_v2 = vld [vmem:[#allocation7 + $0x38] sm:$0xff]  ;;  %v329_v3 = vld [vmem:[#allocation7 + $0x30] sm:$0xff]  ;;  %v320_v4 = vld [vmem:[#allocation5 + $0x28] sm:$0xff]  ;;  %s238_s12 = sshll.u32 %s446_s11, 4  ;;  %s239_s12 = int_to_ptr.vmem [resolvable:$true] %s238_s12 }
  0x10   :  { %219 = vmatpush.bf16.msra.mxu1 %v330_v2  ;;  %v328_v5 = vld [vmem:[#allocation7 + $0x28] sm:$0xff]  ;;  %v319_v6 = vld [vmem:[#allocation5 + $0x20] sm:$0xff]  ;;  %v318_v8 = vld [vmem:[#allocation5 + $0x18] sm:$0xff] }
  0x11   :  { %v327_v7 = vld [vmem:[#allocation7 + $0x20] sm:$0xff]  ;;  %v326_v9 = vld [vmem:[#allocation7 + $0x18] sm:$0xff]  ;;  %v317_v10 = vld [vmem:[#allocation5 + $0x10] sm:$0xff] }
  0x12   :  { %v325_v11 = vld [vmem:[#allocation7 + $0x10] sm:$0xff]  ;;  %v316_v12 = vld [vmem:[#allocation5 + $0x8] sm:$0xff]  ;;  %v315_v13 = vld [vmem:[#allocation5] sm:$0xff] }
  0x13   :  { %137 = vmatpush.bf16.msra.mxu0 %v321_v1  ;;  %v66_v14 = vld [vmem:[#allocation2] sm:$0xff]  ;;  %v324_v16 = vld [vmem:[#allocation7 + $0x8] sm:$0xff]  ;;  %v323_v17 = vld [vmem:[#allocation7] sm:$0xff] }
  0x14   :  { %220 = vmatpush.bf16.msra.mxu1 %v329_v3  ;;  %v67_v15 = vpack.c.bf16 %v66_v14, %v66_v14  ;;  %v337_v18 = vld [vmem:[%s497_s2] ss:$0 sm:$0xff] }
  0x15   :  { %v338_v24 = vld [vmem:[%s499_s4] ss:$0 sm:$0xff] }
  0x17   :  { %138 = vmatpush.bf16.msra.mxu0 %v320_v4 }
  0x18   :  { %221 = vmatpush.bf16.msra.mxu1 %v328_v5 }
  0x1b   :  { %139 = vmatpush.bf16.msra.mxu0 %v319_v6 }
  0x1c   :  { %222 = vmatpush.bf16.msra.mxu1 %v327_v7 }
  0x1f   :  { %140 = vmatpush.bf16.msra.mxu0 %v318_v8 }
  0x20   :  { %223 = vmatpush.bf16.msra.mxu1 %v326_v9 }
  0x23   :  { %141 = vmatpush.bf16.msra.mxu0 %v317_v10 }
  0x24   :  { %224 = vmatpush.bf16.msra.mxu1 %v325_v11 }
  0x27   :  { %142 = vmatpush.bf16.msra.mxu0 %v316_v12 }
  0x28   :  { %225 = vmatpush.bf16.msra.mxu1 %v324_v16 }
  0x2b   :  { %143 = vmatpush.bf16.msra.mxu0 %v315_v13 }
  0x2c   :  { %226 = vmatpush.bf16.msra.mxu1 %v323_v17 }
  0x2e   :  { %144 = vmatmul.bf16.vlgmr.msra.gmra.mxu0 %v67_v15 }
  0xab   :  { %v145_v19 = vpop.f32.mrf.mxu0 }
  0xac   :  { %v146_v20 = vadd.f32 %v337_v18, %v145_v19 }
  0xae   :  { %v149_v21 = vmax.f32 %v146_v20, 0.0 }
  0xb0   :  { %v150_v22 = vpack.c.bf16 %v149_v21, %v149_v21 }
  0xb2   :  { %227 = vmatmul.bf16.vlgmr.msra.gmra.mxu1 %v150_v22 }
  0xb3   :  { %v147_v23 = vpop.f32.mrf.mxu0 }
 0x12f   :  { %v228_v25 = vpop.f32.mrf.mxu1 }
 0x130   :  { %v229_v26 = vadd.f32 %v338_v24, %v228_v25 }
 0x132   :  { %232 = vst [vmem:[#allocation8] sm:$0xff] %v229_v26 }
 0x133   :  { %243 = dma.vmem_to_hbm [thread:$0]  %s239_s12, 128, %s241_s15, [#allocation4]  }
 0x137   :  { %v230_v27 = vpop.f32.mrf.mxu1 }
 0x138   :  { %439 = dma.done.wait [#allocation4], 128  }
 0x139   :  { %440 = vsyncadd [#allocation4], 4294967168 }
 0x13a   :  { %248 = vsyncpa [#allocation3], 1 }
 0x13b   :  { %249 = vsyncpa [#allocation6], 1 }
 0x13c   :  { %250 = vsyncpa [#allocation4], 1 }

</bundles_post_ra>
